<compile_context>
chip_gen: v6e
topology: v6e:2x2x1
jax: 0.10.0
libtpu: 0.0.40
codegen_flags: <defaults>
</compile_context>

<pallas_src>
import functools
import math

import jax
import jax.numpy as jnp
from jax import lax
from jax.experimental import pallas as pl
from jax.experimental.pallas import tpu as pltpu

# ---- config (matches the module's TransformerConfig at small scale) ----
D_MODEL = 32
D_BLOCK = 8          # sequence length
BATCH = 2
LANE = 128           # TPU lane width; k/q/v slabs & output padded to this
NEG_BIG = -1e30      # finite stand-in for -inf in the causal mask


# ---------------- Pallas kernel ----------------

def _sdpa_kernel(x_ref, w_ref, b_ref, o_ref, *, d_model, pad, causal):
    """One batch element per grid step: fused QKV projection + (k @ q^T) attention.

    x_ref : (T, D)        activations for this batch element
    w_ref : (D, 3*pad)    qkv weight, each d_model chunk zero-padded to a 128-lane slab
    b_ref : (1, 3*pad)    qkv bias, padded the same way
    o_ref : (T, pad)      lane-dense output (columns >= d_model are zeros)
    """
    x = x_ref[...]                                                   # (T, D)
    qkv = jnp.dot(x, w_ref[...], preferred_element_type=jnp.float32) + b_ref[...]

    # reference split order: k, q, v = attn(x).split(d_model, dim=2)
    # each slice starts/ends on a 128-lane tile boundary -> no intra-tile lane shuffles
    k = qkv[:, 0 * pad:1 * pad]                                      # (T, pad)
    q = qkv[:, 1 * pad:2 * pad]
    v = qkv[:, 2 * pad:3 * pad]

    # scores[i, j] = k_i . q_j / sqrt(d_model)  (reference computes k @ q^T, not q @ k^T)
    # zero-padded lanes of k/q contribute nothing to the contraction
    s = lax.dot_general(k, q, (((1,), (1,)), ((), ())),
                        preferred_element_type=jnp.float32)          # (T, T)
    s = s * (1.0 / math.sqrt(d_model))

    if causal:  # static Python bool -> mask generated in-kernel, no extra input DMA
        t = s.shape[0]
        row = lax.broadcasted_iota(jnp.int32, (t, t), 0)
        col = lax.broadcasted_iota(jnp.int32, (t, t), 1)
        s = jnp.where(col <= row, s, NEG_BIG)

    # numerically stable softmax over the key axis; masked entries underflow to exactly 0
    s = s - jnp.max(s, axis=-1, keepdims=True)
    e = jnp.exp(s)
    p = e * pl.reciprocal(jnp.sum(e, axis=-1, keepdims=True), approx=True)

    # (T, T) @ (T, pad) -> (T, pad): full-width, unmasked vector stores
    o_ref[...] = jnp.dot(p, v, preferred_element_type=jnp.float32)


# ---------------- setup (done once, outside the per-call path) ----------------

def prepare_padded_qkv(w_qkv, b_qkv, d_model=D_MODEL, pad=LANE):
    """Zero-pad each d_model-wide k/q/v chunk of the fused QKV weight/bias to a 128-lane slab."""
    b_qkv = jnp.reshape(b_qkv, (1, 3 * d_model))
    w = jnp.zeros((d_model, 3 * pad), jnp.float32)
    b = jnp.zeros((1, 3 * pad), jnp.float32)
    for i in range(3):
        w = w.at[:, i * pad:i * pad + d_model].set(w_qkv[:, i * d_model:(i + 1) * d_model])
        b = b.at[:, i * pad:i * pad + d_model].set(b_qkv[:, i * d_model:(i + 1) * d_model])
    return w, b


# ---------------- wrapper ----------------

def scaled_dot_product_attention(x, w_pad, b_pad, *, causal=False):
    """x: (B, T, D) f32; w_pad: (D, 3*LANE); b_pad: (1, 3*LANE). Returns (B, T, D)."""
    B, T, D = x.shape
    out = pl.pallas_call(
        functools.partial(_sdpa_kernel, d_model=D, pad=LANE, causal=causal),
        out_shape=jax.ShapeDtypeStruct((B, T, LANE), jnp.float32),
        grid=(B,),
        in_specs=[
            pl.BlockSpec((None, T, D), lambda b: (b, 0, 0)),       # per-batch activations
            pl.BlockSpec((D, 3 * LANE), lambda b: (0, 0)),         # weights stay resident
            pl.BlockSpec((1, 3 * LANE), lambda b: (0, 0)),
        ],
        out_specs=pl.BlockSpec((None, T, LANE), lambda b: (b, 0, 0)),
        compiler_params=pltpu.CompilerParams(
            dimension_semantics=("parallel",)),                    # v7x: batch across 2 TCs
    )(x.astype(jnp.float32), w_pad, b_pad)
    return out[:, :, :D]                                           # drop lane padding


# ---------------- pure-JAX reference (mirrors the PyTorch module) ----------------

def _reference_sdpa(x, w_qkv, b_qkv, *, causal):
    B, T, D = x.shape
    qkv = jnp.einsum("btd,de->bte", x, w_qkv) + jnp.reshape(b_qkv, (1, 1, -1))
    k, q, v = jnp.split(qkv, 3, axis=-1)
    kq = jnp.einsum("btd,bsd->bts", k, q) / math.sqrt(D)           # k @ q^T (reference quirk)
    if causal:
        m = jnp.tril(jnp.ones((T, T), jnp.float32))
        kq = jnp.where(m[None] == 0, -jnp.inf, kq)
    p = jax.nn.softmax(kq, axis=-1)
    return jnp.einsum("bts,bsd->btd", p, v)


# ---------------- main ----------------

if __name__ == "__main__":
    key = jax.random.PRNGKey(0)
    kx, kw, kb = jax.random.split(key, 3)

    x = jax.random.normal(kx, (BATCH, D_BLOCK, D_MODEL), dtype=jnp.float32)
    w_qkv = (0.02 * jax.random.normal(kw, (D_MODEL, 3 * D_MODEL))).astype(jnp.float32)
    b_qkv = (0.02 * jax.random.normal(kb, (1, 3 * D_MODEL))).astype(jnp.float32)

    w_pad, b_pad = prepare_padded_qkv(w_qkv, b_qkv)                # one-time layout prep

    # forward(x, mask=True) path (causal) and forward(x) path (no mask)
    out_masked = scaled_dot_product_attention(x, w_pad, b_pad, causal=True)
    out_plain = scaled_dot_product_attention(x, w_pad, b_pad, causal=False)
    jax.block_until_ready((out_masked, out_plain))

    assert out_masked.shape == (BATCH, D_BLOCK, D_MODEL), out_masked.shape
    assert out_plain.shape == (BATCH, D_BLOCK, D_MODEL), out_plain.shape
    assert bool(jnp.all(jnp.isfinite(out_masked)))
    assert bool(jnp.all(jnp.isfinite(out_plain)))

    ref_masked = _reference_sdpa(x, w_qkv, b_qkv, causal=True)
    ref_plain = _reference_sdpa(x, w_qkv, b_qkv, causal=False)
    assert bool(jnp.allclose(out_masked, ref_masked, atol=5e-3, rtol=5e-2))
    assert bool(jnp.allclose(out_plain, ref_plain, atol=5e-3, rtol=5e-2))

    print("KERNEL_OK")
</pallas_src>

<mosaic_0001>
module attributes {stable_mosaic.version = 11 : i64} {
  func.func @_sdpa_kernel(%arg0: i32, %arg1: memref<1x8x32xf32, #tpu.memory_space<vmem>>, %arg2: memref<32x384xf32, #tpu.memory_space<vmem>>, %arg3: memref<1x384xf32, #tpu.memory_space<vmem>>, %arg4: memref<1x8x128xf32, #tpu.memory_space<vmem>>) attributes {dimension_semantics = [#tpu.dimension_semantics<parallel>], iteration_bounds = array<i64: 2>, scalar_prefetch = 0 : i64, scratch_operands = 0 : i64, tpu.core_type = #tpu.core_type<tc>, window_params = [{transform_indices = @transform_0, window_bounds = array<i64: 1, 8, 32>}, {pipeline_mode = #tpu.pipeline_mode<synchronous>, transform_indices = @transform_1, window_bounds = array<i64: 32, 384>}, {pipeline_mode = #tpu.pipeline_mode<synchronous>, transform_indices = @transform_2, window_bounds = array<i64: 1, 384>}, {transform_indices = @transform_3, window_bounds = array<i64: 1, 8, 128>}]} {
    %c0 = arith.constant 0 : index
    %c0_0 = arith.constant 0 : index
    %c0_1 = arith.constant 0 : index
    %0 = vector.load %arg1[%c0, %c0_0, %c0_1] : memref<1x8x32xf32, #tpu.memory_space<vmem>>, vector<1x8x32xf32>
    %1 = vector.shape_cast %0 : vector<1x8x32xf32> to vector<8x32xf32>
    %c0_2 = arith.constant 0 : index
    %c0_3 = arith.constant 0 : index
    %2 = vector.load %arg2[%c0_2, %c0_3] : memref<32x384xf32, #tpu.memory_space<vmem>>, vector<32x384xf32>
    %cst = arith.constant dense<0.000000e+00> : vector<8x384xf32>
    %3 = tpu.matmul %1, %2, %cst {dimension_numbers = #tpu.dot_dimension_numbers<[1], [0], [0], [1], [0, 0, 1, 1], [], []>} : vector<8x32xf32>, vector<32x384xf32>, vector<8x384xf32> -> vector<8x384xf32>
    %c0_4 = arith.constant 0 : index
    %c0_5 = arith.constant 0 : index
    %4 = vector.load %arg3[%c0_4, %c0_5] : memref<1x384xf32, #tpu.memory_space<vmem>>, vector<1x384xf32>
    %5 = vector.broadcast %4 : vector<1x384xf32> to vector<8x384xf32>
    %6 = arith.addf %3, %5 : vector<8x384xf32>
    %7 = vector.extract_strided_slice %6 {offsets = [0, 0], sizes = [8, 128], strides = [1, 1]} : vector<8x384xf32> to vector<8x128xf32>
    %8 = vector.extract_strided_slice %6 {offsets = [0, 128], sizes = [8, 128], strides = [1, 1]} : vector<8x384xf32> to vector<8x128xf32>
    %9 = vector.extract_strided_slice %6 {offsets = [0, 256], sizes = [8, 128], strides = [1, 1]} : vector<8x384xf32> to vector<8x128xf32>
    %cst_6 = arith.constant dense<0.000000e+00> : vector<8x8xf32>
    %10 = tpu.matmul %7, %8, %cst_6 {dimension_numbers = #tpu.dot_dimension_numbers<[1], [1], [0], [0], [0, 0, 1, 0], [], []>} : vector<8x128xf32>, vector<8x128xf32>, vector<8x8xf32> -> vector<8x8xf32>
    %cst_7 = arith.constant 0.176776692 : f32
    %11 = vector.broadcast %cst_7 : f32 to vector<8x8xf32>
    %12 = arith.mulf %10, %11 : vector<8x8xf32>
    %13 = tpu.iota {dimensions = array<i32: 0>} : vector<8x8xi32>
    %14 = tpu.iota {dimensions = array<i32: 1>} : vector<8x8xi32>
    %15 = arith.cmpi sle, %14, %13 : vector<8x8xi32>
    %cst_8 = arith.constant -1.000000e+30 : f32
    %16 = vector.broadcast %cst_8 : f32 to vector<8x8xf32>
    %17 = arith.select %15, %12, %16 : vector<8x8xi1>, vector<8x8xf32>
    %cst_9 = arith.constant dense<0xFF800000> : vector<8xf32>
    %18 = vector.multi_reduction <maximumf>, %17, %cst_9 [1] : vector<8x8xf32> to vector<8xf32>
    %19 = vector.shape_cast %18 : vector<8xf32> to vector<8x1xf32>
    %20 = vector.broadcast %19 : vector<8x1xf32> to vector<8x8xf32>
    %21 = arith.subf %17, %20 : vector<8x8xf32>
    %22 = math.exp %21 : vector<8x8xf32>
    %cst_10 = arith.constant dense<0.000000e+00> : vector<8xf32>
    %23 = vector.multi_reduction <add>, %22, %cst_10 [1] : vector<8x8xf32> to vector<8xf32>
    %24 = vector.shape_cast %23 : vector<8xf32> to vector<8x1xf32>
    %25 = tpu.reciprocal %24 {approx = true} : vector<8x1xf32> -> vector<8x1xf32>
    %26 = vector.broadcast %25 : vector<8x1xf32> to vector<8x8xf32>
    %27 = arith.mulf %22, %26 : vector<8x8xf32>
    %cst_11 = arith.constant dense<0.000000e+00> : vector<8x128xf32>
    %28 = tpu.matmul %27, %9, %cst_11 {dimension_numbers = #tpu.dot_dimension_numbers<[1], [0], [0], [1], [0, 0, 1, 1], [], []>} : vector<8x8xf32>, vector<8x128xf32>, vector<8x128xf32> -> vector<8x128xf32>
    %c0_12 = arith.constant 0 : index
    %c0_13 = arith.constant 0 : index
    %c0_14 = arith.constant 0 : index
    %29 = vector.load %arg4[%c0_12, %c0_13, %c0_14] : memref<1x8x128xf32, #tpu.memory_space<vmem>>, vector<1x8x128xf32>
    %30 = vector.shape_cast %29 : vector<1x8x128xf32> to vector<8x128xf32>
    %31 = vector.shape_cast %28 : vector<8x128xf32> to vector<1x8x128xf32>
    tpu.vector_store %arg4[%c0_12, %c0_13, %c0_14], %31 {strides = array<i32>} : memref<1x8x128xf32, #tpu.memory_space<vmem>>, vector<1x8x128xf32>,
    return
  }
  func.func @transform_0(%arg0: i32) -> (i32, i32, i32) {
    %c0_i32 = arith.constant 0 : i32
    %c0_i32_0 = arith.constant 0 : i32
    %c0_i32_1 = arith.constant 0 : i32
    return %arg0, %c0_i32, %c0_i32_0 : i32, i32, i32
  }
  func.func @transform_1(%arg0: i32) -> (i32, i32) {
    %c0_i32 = arith.constant 0 : i32
    %c0_i32_0 = arith.constant 0 : i32
    %c0_i32_1 = arith.constant 0 : i32
    return %c0_i32, %c0_i32_0 : i32, i32
  }
  func.func @transform_2(%arg0: i32) -> (i32, i32) {
    %c0_i32 = arith.constant 0 : i32
    %c0_i32_0 = arith.constant 0 : i32
    %c0_i32_1 = arith.constant 0 : i32
    return %c0_i32, %c0_i32_0 : i32, i32
  }
  func.func @transform_3(%arg0: i32) -> (i32, i32, i32) {
    %c0_i32 = arith.constant 0 : i32
    %c0_i32_0 = arith.constant 0 : i32
    %c0_i32_1 = arith.constant 0 : i32
    return %arg0, %c0_i32, %c0_i32_0 : i32, i32, i32
  }
}

</mosaic_0001>

<bundles_post_ra>
// kernel: tpu_custom_call.1
= control target key start
LH: loop header
LB: loop body
LE: loop exit
PB: predicated region body
PF: predicated region fallthrough
CT: control target
= control target key end

     0   :  { %8 = vsyncpa [#allocation3], 0  ;;  %s1077_s0 = inlined_call_operand.hbm [shape: f32[2,8,32], index: 0, kind: input, shape index: {}]   ;;  %s1078_s1 = inlined_call_operand.hbm [shape: f32[32,384], index: 1, kind: input, shape index: {}]   ;;  %s1079_s2 = inlined_call_operand.vmem [shape: f32[1,384], index: 2, kind: input, shape index: {}]   ;;  %s1080_s3 = inlined_call_operand.hbm [shape: f32[2,8,128], index: 3, kind: output, shape index: {}]  }
   0x1   :  { %10 = vsyncpa [#allocation3 + $0x1], 0 }
   0x2   :  { %11 = vsyncpa [#allocation6], 0 }
   0x3   :  { %12 = vsyncpa [#allocation4], 0 }
   0x4   :  { %14 = vsyncpa [#allocation4 + $0x1], 0  ;;  %s896_s12 = smov 0   ;;  %s898_s13 = smov 0  }
   0x5   :  { %s900_s14 = smov 0   ;;  %s902_s15 = smov 0  }
   0x6 LB: > { %s917_s16 = sadd.s32 4294967295, %s867_s15   ;;  %s633_s17 = sadd.s32 4294967294, %s867_s15   ;;  %s867_s15 = sphi %s902_s15, %s1102_s15   ;;  %s863_s14 = sphi %s900_s14, %s1101_s14   ;;  %s859_s13 = sphi %s898_s13, %s1100_s13   ;;  %s855_s12 = sphi %s896_s12, %s1099_s12  }
   0x7   : > { %p40_p0 = scmp.ne.s32.totalorder %s859_s13, %s855_s12  ;;  %p1081_p1 = scmp.eq.s32.totalorder %s917_s16, 0 }
   0x8   : > { %p112_p3 = scmp.eq.s32.totalorder %s633_s17, 1  ;;  %p634_p5 = scmp.ge.s32.totalorder %s867_s15, 1 }
   0x9   : > { %p926_p4 = por %p1081_p1, %p40_p0  ;;  %p119_p7 = scmp.lt.s32.totalorder %s867_s15, 3 }
   0xa   : > { %p931_p6 = por %p112_p3, %p40_p0  ;;  %s869_s21 = smov [#allocation5]  }
   0xb   : > { %s1085_s18 = scalar_select %p926_p4, 1, 0 }
   0xc   : > { %s1086_s19 = scalar_select %p931_p6, 1, 0 }
   0xd   : > { %p936_p8 = pnand %p634_p5, %p119_p7  ;;  %s131_s22 = sshll.u32 %s869_s21, 4  ;;  %s132_s22 = int_to_ptr.vmem [resolvable:$true] %s131_s22 }
   0xe   : > { %s950_s24 = sadd.s32 1, %s867_s15   ;;  %s27_s25 = sadd.s32 1, %s863_s14 }
   0xf   : > { %s1087_s20 = scalar_select %p936_p8, 1, 0 }
  0x10   : > { %p688_p9 = pneg %p936_p8  ;;  %s24_s26 = ssub.s32 %s867_s15, %s950_s24 }
  0x11   : > { %s756_s27 = scalar_lea.vmem %s132_s22, 1536  ;;  %p764_p5 = scmp.lt.s32.totalorder %s132_s22, %s132_s22 }
  0x12   : > { %p945_p11 = pnand %p688_p9, %p1081_p1  ;;  %p757_p13 = scmp.ne.s32.totalorder %s132_s22, %s756_s27 }
  0x13   : > { %p765_p7 = scmp.lt.s32.totalorder %s756_s27, %s756_s27 }
  0x14   : > { %p747_p12 = pneg %p945_p11 }
  0x15   : > { %p766_p10 = por %p765_p7, %p764_p5 }
  0x16   : > { %p759_p0 = pnand %p757_p13, %p747_p12 }
  0x18   : > { %p760_p3 = pneg %p759_p0 }
  0x1a   : > { %p767_p2 = pnand %p766_p10, %p760_p3 }
  0x1c   : > { %770 = shalt.err (!%p767_p2)
}
  0x1d   : > { %s870_s28 = smov 384   ;;  %s871_s29 = smov 24  }
  0x1e   : > { %691 = dma.hbm_to_vmem [thread:$0]  (!%p945_p11), %s1078_s1, 1536, %s132_s22, [#allocation6], %s870_s28, %s870_s28, %s871_s29  }
  0x1f   : > { %p25_p9 = scmp.eq.s32.totalorder %s24_s26, 0  ;;  %p34_p12 = scmp.ne.s32.totalorder %s863_s14, %s859_s13 }
  0x20   : > { %p35_p10 = scmp.eq.s32.totalorder %s867_s15, 0  ;;  %p701_p2 = scmp.lt.s32.totalorder %s867_s15, 2 }
  0x21   : > { %s967_s5 = scalar_select %p25_p9, %s863_s14, %s27_s25  }
  0x22   : > { %p36_p13 = por %p35_p10, %p34_p12  ;;  %p1089_p0 = scmp.eq.s32.totalorder %s917_s16, 1 }
  0x23   : > { %s148_s7 = sand.u32 1, %s863_s14   ;;  %s638_s8 = sshll.u32 %s867_s15, 7 }
  0x24   : > { %p971_p3 = por %p1089_p0, %p34_p12  ;;  %s637_s9 = sshll.u32 %s148_s7, 3 }
  0x25   : > { %s980_s17 = scalar_lea.hbm %s1077_s0, %s638_s8  ;;  %s152_s21 = scalar_lea.vmem [#allocation2], %s637_s9 }
  0x26   : > { %s1090_s6 = scalar_select %p971_p3, 1, 0 }
  0x27   : > { %s159_s22 = sshll.u32 %s152_s21, 4  ;;  %p982_p11 = pnand %p701_p2, %p36_p13  ;;  %s160_s22 = int_to_ptr.vmem [resolvable:$true] %s159_s22 }
  0x28   : > { %s149_s25 = scalar_lea.sflag [#allocation3], %s148_s7  ;;  %s771_s26 = scalar_lea.hbm %s980_s17, 128 }
  0x29   : > { %p772_p5 = scmp.ne.s32.totalorder %s980_s17, %s771_s26  ;;  %p773_p7 = pneg %p982_p11 }
  0x2a   : > { %s776_s29 = scalar_lea.hbm %s1077_s0, 256  ;;  %p777_p10 = scmp.lt.s32.totalorder %s980_s17, %s1077_s0 }
  0x2b   : > { %p774_p9 = pnand %p773_p7, %p772_p5  ;;  %p778_p2 = scmp.lt.s32.totalorder %s776_s29, %s771_s26 }
  0x2d   : > { %p775_p12 = pneg %p774_p9  ;;  %p779_p13 = por %p778_p2, %p777_p10 }
  0x2f   : > { %p780_p0 = pnand %p779_p13, %p775_p12 }
  0x31   : > { %783 = shalt.err (!%p780_p0)
}
  0x32   : > { %s784_s8 = scalar_lea.vmem %s160_s22, 128  ;;  %s872_s7 = smov [#allocation2]  }
  0x33   : > { %p785_p1 = scmp.ne.s32.totalorder %s160_s22, %s784_s8  ;;  %s789_s9 = sshll.u32 %s872_s7, 4  ;;  %s790_s9 = int_to_ptr.vmem [resolvable:$false] %s789_s9 }
  0x34   : > { %s791_s10 = scalar_lea.vmem %s790_s9, 256  ;;  %p792_p5 = scmp.lt.s32.totalorder %s160_s22, %s790_s9 }
  0x35   : > { %p787_p6 = pnand %p785_p1, %p773_p7  ;;  %p793_p9 = scmp.lt.s32.totalorder %s791_s10, %s784_s8 }
  0x37   : > { %p788_p3 = pneg %p787_p6  ;;  %p794_p4 = por %p793_p9, %p792_p5 }
  0x39   : > { %p795_p8 = pnand %p794_p4, %p788_p3 }
  0x3b   : > { %798 = shalt.err (!%p795_p8)
}
  0x3c   : > { %695 = dma.hbm_to_vmem [thread:$0]  (!%p982_p11), %s980_s17, 128, %s160_s22, %s149_s25  }
  0x3d   : > { %p1092_p12 = scmp.ne.s32.totalorder %s1087_s20, 0 }
  0x3e   : > { %s1003_s11 = sand.u32 (!%p1092_p12), 1, %s859_s13   ;;  %p1093_p1 = scmp.ne.s32.totalorder (!%p1092_p12), %s1085_s18, 0 }
  0x3f   : > { %168 = sbr.rel (%p1092_p12) target bundleno = 997 (0x3e5), region = 32  ;;  %s640_s21 = sshll.u32 (!%p1092_p12), %s1003_s11, 3 }
  0x40   : > { %s171_s26 = scalar_lea.sflag (!%p1092_p12), [#allocation3], %s1003_s11  ;;  %s174_s27 = scalar_lea.vmem (!%p1092_p12), [#allocation2], %s640_s21 }
  0x44   : > { %842 = dma.done.wait (%p1093_p1), %s171_s26, 128  }
  0x45   : > { %844 = vsyncadd (%p1093_p1), %s171_s26, 4294967168  ;;  %p1094_p4 = scmp.eq.s32.totalorder %s917_s16, 0 }
  0x47   : > { %846 = dma.done.wait (%p1094_p4), [#allocation6], 1536   ;;  %p1095_p6 = pmov %p1094_p4 }
  0x48   : > { %v873_v0 = vmov 0.0   ;;  %v212_v1 = vld [vmem:[#allocation5 + $0x50] sm:$0xff]  ;;  %v211_v2 = vld [vmem:[#allocation5 + $0x48] sm:$0xff]  ;;  %v209_v3 = vld [vmem:[#allocation5 + $0x38] sm:$0xff]  ;;  %vm231_vm0 = vcmask 261120   ;;  %vm874_vm1 = vmmov 0   ;;  %v216_v10 = vlaneseq }
  0x49   : > { %848 = vsyncadd (%p1095_p6), [#allocation6], 4294965760  ;;  %299 = vmatprep.mubr.f32.mxu0 %v873_v0  ;;  %659 = vmatprep.subr.mxu1 %v873_v0  ;;  %v208_v4 = vld [vmem:[#allocation5 + $0x30] sm:$0xff]  ;;  %v206_v5 = vld [vmem:[#allocation5 + $0x20] sm:$0xff]  ;;  %vm453_vm3 = vcmask 64512   ;;  %s200_s17 = scalar_lea.vmem [#allocation7], %s640_s21 }
  0x4a   : > { %259 = vmatprep.subr.mxu0 %v212_v1  ;;  %v205_v6 = vld [vmem:[#allocation5 + $0x18] sm:$0xff]  ;;  %v203_v7 = vld [vmem:[#allocation5 + $0x8] sm:$0xff]  ;;  %v202_v8 = vld [vmem:[#allocation5] sm:$0xff]  ;;  %667 = vmatprep.mubr.msk.f32.mxu1 %vm874_vm1, %v873_v0  ;;  %v217_v11 = vshrl.u32 %v216_v10, 7  ;;  %v450_v25 = vand.u32 127, %v216_v10  ;;  %s553_s22 = sshll.u32 %s200_s17, 4  ;;  %s1031_s22 = int_to_ptr.vmem [resolvable:$true] %s553_s22 }
  0x4b   : > { %260 = vmatpush1.msra.mxu0 %v211_v2  ;;  %v201_v9 = vld [vmem:[%s174_s27] sm:$0xff]  ;;  %v210_v22 = vld [vmem:[#allocation5 + $0x40] sm:$0xff]  ;;  %v207_v23 = vld [vmem:[#allocation5 + $0x28] sm:$0xff]  ;;  %s647_s23 = sshll.u32 %s917_s16, 7  ;;  %s540_s30 = scalar_lea.sflag [#allocation4], %s1003_s11 }
  0x4c   : > { %261 = vmatprep.subr.mxu0 %v209_v3  ;;  %v222_v12 = vsub.s32 1, %v217_v11  ;;  %v214_v13 = vld [vmem:[%s1079_s2] sm:$0x7]  ;;  %v218_v14 = vsub.s32 0, %v217_v11  ;;  %v213_v21 = vld [vmem:[#allocation5 + $0x58] sm:$0xff]  ;;  %vm451_vm2 = vcmp.le.s32.totalorder %v450_v25, %v217_v11  ;;  %v226_v36 = vsub.s32 2, %v217_v11  ;;  %s1036_s29 = scalar_lea.hbm %s1080_s3, %s647_s23 }
  0x4d   : > { %262 = vmatpush1.msra.mxu0 %v208_v4  ;;  %660 = vmatpush3.msra.mxu1 %v213_v21  ;;  %v204_v24 = vld [vmem:[#allocation5 + $0x10] sm:$0xff]  ;;  %s799_s4 = scalar_lea.vmem %s1031_s22, 128  ;;  %p1096_p3 = scmp.ne.s32.totalorder %s1090_s6, 0 }
  0x4e   : > { %263 = vmatprep.subr.mxu0 %v206_v5  ;;  %v223_v15 = vrot.slane %v214_v13, %v222_v12  ;;  %v219_v17 = vrot.slane %v214_v13, %v218_v14  ;;  %661 = vmatprep.subr.mxu1 %v873_v0  ;;  %v227_v38 = vrot.slane %v214_v13, %v226_v36  ;;  %p800_p8 = scmp.ne.s32.totalorder %s1031_s22, %s799_s4  ;;  %s875_s16 = smov [#allocation7]  }
  0x4f   : > { %264 = vmatpush1.msra.mxu0 %v205_v6  ;;  %662 = vmatpush3.msra.mxu1 %v210_v22  ;;  %s803_s8 = sshll.u32 %s875_s16, 4  ;;  %s804_s8 = int_to_ptr.vmem [resolvable:$false] %s803_s8 }
  0x50   : > { %265 = vmatprep.subr.mxu0 %v203_v7  ;;  %663 = vmatprep.subr.mxu1 %v873_v0  ;;  %p801_p11 = pnand %p800_p8, %p1096_p3  ;;  %s805_s7 = scalar_lea.vmem %s804_s8, 256 }
  0x51   : > { %266 = vmatpush1.msra.mxu0 %v202_v8  ;;  %664 = vmatpush3.msra.mxu1 %v207_v23  ;;  %p806_p10 = scmp.lt.s32.totalorder %s1031_s22, %s804_s8  ;;  %p807_p2 = scmp.lt.s32.totalorder %s805_s7, %s799_s4 }
  0x52   : > { %643 = vmatmul.mubr.msk.f32.vlgmr.msra.gmra.mxu0 %vm231_vm0, %v201_v9  ;;  %670 = vmatprep.subr.mxu0 %v873_v0  ;;  %p802_p7 = pneg %p801_p11 }
  0x53   : > { %672 = vmatprep.mubr.msk.f32.mxu0 %vm874_vm1, %v873_v0  ;;  %665 = vmatprep.subr.mxu1 %v873_v0  ;;  %p808_p13 = por %p807_p2, %p806_p10 }
  0x54   : > { %666 = vmatpush3.msra.mxu1 %v204_v24 }
  0x55   : > { %668 = vmatmul.mubr.msk.f32.vlgmr.msra.gmra.mxu1 %vm231_vm0, %v201_v9  ;;  %675 = vmatprep.subr.mxu1 %v873_v0  ;;  %p809_p0 = pnand %p808_p13, %p802_p7 }
  0x56   : > { %677 = vmatprep.mubr.msk.f32.mxu1 %vm874_vm1, %v873_v0 }
 0x112   : > { %v301_v16 = vpop.f32.mrf.mxu0 }
 0x113   : > { %v302_v20 = vadd.f32 %v301_v16, %v219_v17 }
 0x114   : > { %v303_v18 = vpop.f32.mrf.mxu0 }
 0x115   : > { %v304_v19 = vadd.f32 %v303_v18, %v223_v15  ;;  %v372_v37 = vpop.f32.mrf.mxu1 }
 0x116   : > { %v373_v40 = vadd.f32 %v372_v37, %v227_v38 }
 0x117   : > { %671 = vmatpush3.xpose.msra.mxu0 %v304_v19  ;;  %v669_v39 = vpop.f32.mrf.mxu1 }
 0x118   : > { %676 = vmatpush3.msra.mxu1 %v373_v40 }
 0x11a   : > { %673 = vmatmul.mubr.f32.vlgmr.msra.gmra.mxu0 %v302_v20 }
 0x1da   : > { %v442_v26 = vpop.f32.mrf.mxu0 }
 0x1db   : > { %v446_v27 = vmul.f32 0.17677669, %v442_v26 }
 0x1dc   : > { %v674_v28 = vpop.f32.mrf.mxu0 }
 0x1dd   : > { %v452_v29 = vsel %vm451_vm2, %v446_v27, -1e+30 }
 0x1de   : > { %v454_v30 = vsel %vm453_vm3, %v452_v29, -inf }
 0x1df   : > { %455 = vmax.xlane.f32.xlu0 %v454_v30 }
 0x268   : > { %v456_v31 = vpop.xlane.xlu0 %455 }
 0x269   : > { %v457_v32 = vsub.f32 %v452_v29, %v456_v31 }
 0x26b   : > { %v458_v33 = vmul.f32 1.442695, %v457_v32 }
 0x26d   : > { %741 = vpow2.f32 %v458_v33 }
 0x27a   : > { %v742_v34 = vpop.eup %741 }
 0x27b   : > { %v460_v35 = vsel %vm453_vm3, %v742_v34, 0.0 }
 0x27c   : > { %461 = vadd.xlane.f32.xlu0 %v460_v35 }
 0x305   : > { %v462_v41 = vpop.xlane.xlu0 %461 }
 0x306   : > { %743 = vrcp.f32 %v462_v41 }
 0x313   : > { %v744_v42 = vpop.eup %743 }
 0x314   : > { %v464_v43 = vmul.f32 %v744_v42, %v742_v34 }
 0x316   : > { %678 = vmatmul.mubr.msk.f32.vlgmr.msra.gmra.mxu1 %vm453_vm3, %v464_v43 }
 0x3d6   : > { %v534_v44 = vpop.f32.mrf.mxu1 }
 0x3d7   : > { %538 = vst [vmem:[%s200_s17] sm:$0xff] %v534_v44 }
 0x3d8   : > { %v679_v45 = vpop.f32.mrf.mxu1 }
 0x3d9   : > { %812 = shalt.err (!%p809_p0)
}
 0x3da   : > { %s813_s9 = scalar_lea.hbm %s1036_s29, 128  ;;  %s817_s21 = scalar_lea.hbm %s1080_s3, 256 }
 0x3db   : > { %p814_p5 = scmp.ne.s32.totalorder %s1036_s29, %s813_s9  ;;  %p818_p1 = scmp.lt.s32.totalorder %s1036_s29, %s1080_s3 }
 0x3dc   : > { %p819_p4 = scmp.lt.s32.totalorder %s817_s21, %s813_s9 }
 0x3dd   : > { %p815_p9 = pnand %p814_p5, %p1096_p3 }
 0x3de   : > { %p820_p6 = por %p819_p4, %p818_p1 }
 0x3df   : > { %p816_p12 = pneg %p815_p9 }
 0x3e1   : > { %p821_p8 = pnand %p820_p6, %p816_p12 }
 0x3e3   : > { %824 = shalt.err (!%p821_p8)
}
 0x3e4   : > { %686 = dma.vmem_to_hbm [thread:$0]  (%p1096_p3), %s1031_s22, 128, %s1036_s29, %s540_s30  }
 0x3e5 PF: > { %s565_s18 = sand.u32 1, %s855_s12   ;;  %p1097_p11 = scmp.ne.s32.totalorder %s1086_s19, 0 }
 0x3e6   : > { %p1098_p7 = scmp.ge.s32.totalorder %s867_s15, 2  ;;  %s566_s20 = scalar_lea.sflag [#allocation4], %s565_s18 }
 0x3e8   : > { %p697_p10 = pnand %p1098_p7, %p1097_p11 }
 0x3ea   : > { %p698_p2 = pneg %p697_p10 }
 0x3ec   : > { %850 = dma.done.wait (%p698_p2), %s566_s20, 128  }
 0x3ed   : > { %852 = vsyncadd (%p698_p2), %s566_s20, 4294967168  ;;  %p17_p13 = scmp.ge.s32.totalorder %s950_s24, 4   ;;  %s1099_s12 = smov %s859_s13 }
 0x3ee   : > { %s1100_s13 = smov %s863_s14  ;;  %s1101_s14 = smov %s967_s5 }
 0x3ef   : > { %s1102_s15 = smov %s950_s24  ;;  %19 = sbr.rel (!%p17_p13) target bundleno = 6 (0x6), region = 81 }
 0x3f4   :  { %571 = vsyncpa [#allocation3], 1 }
 0x3f5   :  { %573 = vsyncpa [#allocation3 + $0x1], 1 }
 0x3f6   :  { %574 = vsyncpa [#allocation6], 1 }
 0x3f7   :  { %575 = vsyncpa [#allocation4], 1 }
 0x3f8   :  { %577 = vsyncpa [#allocation4 + $0x1], 1 }

</bundles_post_ra>
